<compile_context>
chip_gen: v7x
topology: tpu7x:2x2x1
jax: 0.10.0
libtpu: 0.0.40
codegen_flags: <defaults>
</compile_context>

<pallas_src>
import functools

import jax
import jax.numpy as jnp
from jax.experimental import pallas as pl
from jax.experimental.pallas import tpu as pltpu

NEG_SLOPE = 0.2                      # DGL GATConv default LeakyReLU slope
VMEM_LIMIT_BYTES = 32 * 1024 * 1024  # raise v5e's 16 MiB scoped default


# --------------------------------------------------------------------------- #
# Kernels
# --------------------------------------------------------------------------- #
def _proj_kernel(x_ref, w_ref, feat_ref):
    """feat = x @ [W | W@A]  ->  [N, H*D + 2H], stored bf16 (MXU-ready)."""
    # TODO(synk): for very large N, tile this matmul over node rows as well.
    feat_ref[...] = jnp.dot(
        x_ref[...].astype(jnp.bfloat16), w_ref[...],
        preferred_element_type=jnp.float32).astype(feat_ref.dtype)


def _attn_kernel(feat_ref, featd_ref, bias_ref, out_ref, *,
                 heads, dim, apply_elu, mean_heads):
    """One dst-tile of masked multi-head attention + aggregation.

    feat_ref:  [N, H*D + 2H] bf16  projected features + logits, ALL src nodes
    featd_ref: [T, H*D + 2H] bf16  same array, dst-tile rows only
    bias_ref:  [T, N]        bf16  additive mask (0 edge / -1e9 non-edge)
    out_ref:   [T, H*D] (or [T, D] if mean_heads)
    """
    hd = heads * dim
    feat = feat_ref[...]                                    # [N, HD+2H] bf16
    featd = featd_ref[...]                                  # [T, HD+2H] bf16
    bias = bias_ref[...].astype(jnp.float32)                # cast hoisted out of head loop

    el_all = feat[:, hd:hd + heads].astype(jnp.float32).T          # [H, N] src logits
    er_all = featd[:, hd + heads:hd + 2 * heads].astype(jnp.float32)  # [T, H] dst logits

    outs = []
    for h in range(heads):
        e = er_all[:, h:h + 1] + el_all[h:h + 1, :]         # [T, N]; e[dst, src]
        e = jnp.maximum(e, NEG_SLOPE * e)                   # LeakyReLU(0.2)
        e = e + bias                                        # mask AFTER LeakyReLU
        # Masked softmax over incoming edges; exp(-1e9 - e_max) underflows to 0,
        # row max maps to exp(0)=1 so denom >= 1 (approx reciprocal is safe).
        e_max = jnp.max(e, axis=-1, keepdims=True)
        p = jnp.exp(e - e_max)                              # f32 (v5e-safe)
        denom = jnp.sum(p, axis=-1, keepdims=True)
        o = jnp.dot(p.astype(jnp.bfloat16), feat[:, h * dim:(h + 1) * dim],
                    preferred_element_type=jnp.float32)     # [T, D]
        # Deferred normalization: T*D multiplies instead of T*N.
        outs.append(o * pl.reciprocal(denom, approx=True))

    if mean_heads:
        acc = outs[0]
        for t in outs[1:]:
            acc = acc + t
        res = acc * jnp.float32(1.0 / heads)                # [T, D]
    else:
        res = outs[0] if heads == 1 else jnp.concatenate(outs, axis=-1)  # [T, H*D]

    if apply_elu:
        res = jnp.where(res > 0, res, jnp.exp(jnp.minimum(res, 0.0)) - 1.0)

    out_ref[...] = res.astype(out_ref.dtype)


# --------------------------------------------------------------------------- #
# Wrappers
# --------------------------------------------------------------------------- #
def _project(x, w_fused):
    n = x.shape[0]
    fout = w_fused.shape[1]
    return pl.pallas_call(
        _proj_kernel,
        out_shape=jax.ShapeDtypeStruct((n, fout), jnp.bfloat16),
        in_specs=[pl.BlockSpec(memory_space=pltpu.MemorySpace.VMEM)] * 2,
        out_specs=pl.BlockSpec(memory_space=pltpu.MemorySpace.VMEM),
        compiler_params=pltpu.CompilerParams(vmem_limit_bytes=VMEM_LIMIT_BYTES),
    )(x, w_fused)


def _attention(feat, bias, *, heads, dim, tile_dst, apply_elu, mean_heads,
               out_dtype):
    n, cols = feat.shape
    out_cols = dim if mean_heads else heads * dim
    kernel = functools.partial(_attn_kernel, heads=heads, dim=dim,
                               apply_elu=apply_elu, mean_heads=mean_heads)
    return pl.pallas_call(
        kernel,
        out_shape=jax.ShapeDtypeStruct((n, out_cols), out_dtype),
        grid=(n // tile_dst,),
        in_specs=[
            pl.BlockSpec((n, cols), lambda i: (0, 0)),        # full feat (all src)
            pl.BlockSpec((tile_dst, cols), lambda i: (i, 0)),  # dst-tile of feat
            pl.BlockSpec((tile_dst, n), lambda i: (i, 0)),     # dst-tile of bias
        ],
        out_specs=pl.BlockSpec((tile_dst, out_cols), lambda i: (i, 0)),
        compiler_params=pltpu.CompilerParams(
            dimension_semantics=("parallel",),                 # megacore sharding
            vmem_limit_bytes=VMEM_LIMIT_BYTES),
    )(feat, feat, bias)


def _fuse_weight(w, al, ar):
    """Return bf16 [F_in, H*D + 2H] = [W | W @ A_blockdiag] (trace-time prep)."""
    heads, dim = al.shape
    eye = jnp.eye(heads, dtype=w.dtype)
    a_l = (al[:, :, None] * eye[:, None, :]).reshape(heads * dim, heads)
    a_r = (ar[:, :, None] * eye[:, None, :]).reshape(heads * dim, heads)
    att = jnp.concatenate([a_l, a_r], axis=-1)   # [H*D, 2H] block-diagonal
    w_att = w @ att                              # [F_in, 2H], f32 at trace time
    return jnp.concatenate([w, w_att], axis=-1).astype(jnp.bfloat16)


def gat_forward(adj, x, params, *, tile_dst=None):
    """Matches GAT.forward: layer0 -> flatten(1)+ELU, layer1 -> mean over heads."""
    n = x.shape[0]
    h0, d0 = params["al1"].shape
    h1, d1 = params["al2"].shape

    # Additive attention bias: 0 for edge, -1e9 for non-edge (bf16 halves the
    # dominant N^2 input's HBM DMA and VMEM footprint).
    bias = jnp.where(adj > 0, 0.0, -1e9).astype(jnp.bfloat16)

    wf1 = _fuse_weight(params["w1"], params["al1"], params["ar1"])
    wf2 = _fuse_weight(params["w2"], params["al2"], params["ar2"])

    if tile_dst is None:
        # TODO(synk): sweep per generation — v7x has only 64 MiB VMEM, so use
        # roughly half the dst tile that fits v5e/v6e; for huge N also stream
        # the src axis with an online-softmax inner loop.
        tile_dst = 16 if (n % 16 == 0 and n > 16) else n

    # Layer 0 (multi-head, heads concatenated == flatten(1), ELU).
    feat1 = _project(x, wf1)                                  # [N, H0*D0+2H0] bf16
    h = _attention(feat1, bias, heads=h0, dim=d0, tile_dst=tile_dst,
                   apply_elu=True, mean_heads=False, out_dtype=jnp.float32)

    # Layer 1 (output heads, mean over heads, no activation).
    feat2 = _project(h, wf2)                                  # [N, H1*D1+2H1] bf16
    out = _attention(feat2, bias, heads=h1, dim=d1, tile_dst=tile_dst,
                     apply_elu=False, mean_heads=True, out_dtype=jnp.float32)
    return out


def init_params(key, in_size, hid_size, out_size, heads):
    k1, k2, k3, k4, k5, k6 = jax.random.split(key, 6)
    h0, h1 = heads
    s1 = 1.0 / jnp.sqrt(jnp.float32(in_size))
    s2 = 1.0 / jnp.sqrt(jnp.float32(hid_size * h0))
    return {
        "w1": jax.random.normal(k1, (in_size, h0 * hid_size), jnp.float32) * s1,
        "al1": jax.random.normal(k2, (h0, hid_size), jnp.float32) * 0.1,
        "ar1": jax.random.normal(k3, (h0, hid_size), jnp.float32) * 0.1,
        "w2": jax.random.normal(k4, (hid_size * h0, h1 * out_size), jnp.float32) * s2,
        "al2": jax.random.normal(k5, (h1, out_size), jnp.float32) * 0.1,
        "ar2": jax.random.normal(k6, (h1, out_size), jnp.float32) * 0.1,
    }


if __name__ == "__main__":
    N = 32          # nodes (multiple of 16 so the dst grid has 2 tiles)
    IN_SIZE = 8     # n_hidden = in_size = 8 in the reference
    HID_SIZE = 8
    OUT_SIZE = 4
    HEADS = (4, 1)

    root = jax.random.PRNGKey(0)
    k_feat, k_adj, k_param = jax.random.split(root, 3)

    # Node features [N, in_size].
    x = jax.random.normal(k_feat, (N, IN_SIZE), jnp.float32)

    # Deterministic random graph with self-loops; adj[dst, src].
    adj = (jax.random.uniform(k_adj, (N, N)) < 0.3).astype(jnp.float32)
    adj = jnp.maximum(adj, jnp.eye(N, dtype=jnp.float32))

    params = init_params(k_param, IN_SIZE, HID_SIZE, OUT_SIZE, HEADS)

    out = gat_forward(adj, x, params)
    jax.block_until_ready(out)
    assert out.shape == (N, OUT_SIZE)
    print("KERNEL_OK")
</pallas_src>

<mosaic_0001>
module attributes {stable_mosaic.version = 11 : i64} {
  func.func @_proj_kernel(%arg0: memref<32x8xf32, #tpu.memory_space<vmem>>, %arg1: memref<8x40xbf16, #tpu.memory_space<vmem>>, %arg2: memref<32x40xbf16, #tpu.memory_space<vmem>>) attributes {dimension_semantics = [], scalar_prefetch = 0 : i64, scratch_operands = 0 : i64, tpu.core_type = #tpu.core_type<tc>} {
    %c0 = arith.constant 0 : index
    %c0_0 = arith.constant 0 : index
    %0 = vector.load %arg0[%c0, %c0_0] : memref<32x8xf32, #tpu.memory_space<vmem>>, vector<32x8xf32>
    %1 = arith.truncf %0 : vector<32x8xf32> to vector<32x8xbf16>
    %c0_1 = arith.constant 0 : index
    %c0_2 = arith.constant 0 : index
    %2 = vector.load %arg1[%c0_1, %c0_2] : memref<8x40xbf16, #tpu.memory_space<vmem>>, vector<8x40xbf16>
    %cst = arith.constant dense<0.000000e+00> : vector<32x40xf32>
    %3 = tpu.matmul %1, %2, %cst {dimension_numbers = #tpu.dot_dimension_numbers<[1], [0], [0], [1], [0, 0, 1, 1], [], []>} : vector<32x8xbf16>, vector<8x40xbf16>, vector<32x40xf32> -> vector<32x40xf32>
    %4 = arith.truncf %3 : vector<32x40xf32> to vector<32x40xbf16>
    %c0_3 = arith.constant 0 : index
    %c0_4 = arith.constant 0 : index
    %5 = vector.load %arg2[%c0_3, %c0_4] : memref<32x40xbf16, #tpu.memory_space<vmem>>, vector<32x40xbf16>
    tpu.vector_store %arg2[%c0_3, %c0_4], %4 {strides = array<i32>} : memref<32x40xbf16, #tpu.memory_space<vmem>>, vector<32x40xbf16>,
    return
  }
}

</mosaic_0001>

<bundles_post_ra>
// kernel: tpu_custom_call.1
= control target key start
LH: loop header
LB: loop body
LE: loop exit
PB: predicated region body
PF: predicated region fallthrough
CT: control target
= control target key end

     0   :  { %vm27_vm0 = vcmask 1043456   ;;  %vm20_vm1 = vcmask 64512   ;;  %s209_s0 = inlined_call_operand.vmem [shape: f32[32,8], index: 0, kind: input, shape index: {}]   ;;  %s210_s1 = inlined_call_operand.vmem [shape: bf16[8,40], index: 1, kind: input, shape index: {}]   ;;  %s211_s2 = inlined_call_operand.hbm [shape: bf16[32,40], index: 2, kind: output, shape index: {}]  }
   0x1   :  { %v19_v0 = vld [vmem:[%s210_s1] sm:$0xf]  ;;  %v14_v2 = vld [vmem:[%s209_s0 + $0x8] sm:$0xff]  ;;  %v15_v5 = vld [vmem:[%s209_s0 + $0x10] sm:$0xff] }
   0x2   :  { %v13_v1 = vld [vmem:[%s209_s0] sm:$0xff]  ;;  %136 = vmatprep.subr.msk.bf16.mxu0 %vm27_vm0, %v19_v0  ;;  %v29_v3 = vsel %vm27_vm0, %v19_v0, 0  ;;  %v16_v6 = vld [vmem:[%s209_s0 + $0x18] sm:$0xff] }
   0x3   :  { %v17_v4 = vpack.c.bf16 %v14_v2, %v13_v1 }
   0x4   :  { %7 = vsyncpa [#allocation3], 0  ;;  %131 = vmatpush3.bf16.msra.mxu0 %v29_v3  ;;  %v18_v7 = vpack.c.bf16 %v16_v6, %v15_v5  ;;  %vm96_vm2 = vcmask 322560   ;;  %s164_s1 = smov [#allocation2]  }
   0x5   :  { %132 = vmatprep.mubr.msk.bf16.mxu0 %vm20_vm1, %v17_v4  ;;  %s106_s19 = sshll.u32 %s164_s1, 4  ;;  %s107_s19 = int_to_ptr.vmem [resolvable:$true] %s106_s19 }
   0x6   :  { %s140_s0 = scalar_lea.vmem %s107_s19, 256  ;;  %p145_p1 = scmp.lt.s32.totalorder %s107_s19, %s107_s19 }
   0x7   :  { %133 = vmatmul.mubr.msk.bf16.vlgmr.msra.gmra.mrb[0].mxu0 %vm20_vm1, %v18_v7  ;;  %p141_p0 = scmp.ne.s32.totalorder %s107_s19, %s140_s0  ;;  %p146_p2 = scmp.lt.s32.totalorder %s140_s0, %s140_s0 }
   0x9   :  { %p147_p3 = por %p146_p2, %p145_p1 }
   0xb   :  { %p148_p4 = pnand %p147_p3, %p141_p0 }
  0xda   :  { %v134_v8 = vpop.f32.mrb[0].mxu0 }
  0xdb   :  { %v125_v9 = vpack.c.bf16 %v134_v8, %v134_v8  ;;  %v65_v10 = vpop.f32.mrb[1].mxu0 }
  0xdc   :  { %v123_v11 = vpack.c.bf16 %v65_v10, %v65_v10  ;;  %v135_v12 = vpop.f32.mrb[2].mxu0 }
  0xdd   :  { %99 = vst.msk [vmem:[#allocation2 + $0x8] sm:$0xf] %vm96_vm2, %v125_v9  ;;  %v126_v13 = vpack.c.bf16 %v135_v12, %v135_v12  ;;  %v68_v14 = vpop.f32.mrb[3].mxu0 }
  0xde   :  { %97 = vst.msk [vmem:[#allocation2] sm:$0xf] %vm96_vm2, %v123_v11  ;;  %v124_v15 = vpack.c.bf16 %v68_v14, %v68_v14 }
  0xdf   :  { %100 = vst.msk [vmem:[#allocation2 + $0xc] sm:$0xf] %vm96_vm2, %v126_v13 }
  0xe0   :  { %98 = vst.msk [vmem:[#allocation2 + $0x4] sm:$0xf] %vm96_vm2, %v124_v15 }
  0xe1   :  { %151 = shalt.err (!%p148_p4)
}
  0xe2   :  { %s152_s22 = scalar_lea.hbm %s211_s2, 256 }
  0xe3   :  { %p153_p5 = scmp.ne.s32.totalorder %s211_s2, %s152_s22  ;;  %p156_p6 = scmp.lt.u32.totalorder %s152_s22, %s211_s2 }
  0xe5   :  { %p158_p7 = pnand %p156_p6, %p153_p5 }
  0xe7   :  { %161 = shalt.err (!%p158_p7)
}
  0xe8   :  { %s165_s27 = smov 64   ;;  %s166_s28 = smov 4  }
  0xe9   :  { %112 = dma.vmem_to_hbm [thread:$0]  %s107_s19, 256, %s211_s2, [#allocation3], %s165_s27, %s165_s27, %s166_s28  }
  0xea   :  { %162 = dma.done.wait [#allocation3], 256  }
  0xeb   :  { %163 = vsyncadd [#allocation3], 4294967040 }
  0xec   :  { %116 = vsyncpa [#allocation3], 1 }

</bundles_post_ra>
